<compile_context>
chip_gen: v7x
topology: tpu7x:2x2x1
jax: 0.10.0
libtpu: 0.0.40
codegen_flags: <defaults>
</compile_context>

<pallas_src>
import functools

import jax
import jax.numpy as jnp
from jax.experimental import pallas as pl
from jax.experimental.pallas import tpu as pltpu


def _lstm_mlp_kernel(xproj_ref, stat_ref, whh_t_ref, w1h_t_ref, w1s_t_ref,
                     b1_ref, w2_t_ref, b2_ref, out_ref, h_slab,
                     *, hidden_size, seq_len, batch_tile, fc1_width):
    H, T, TB, FH = hidden_size, seq_len, batch_tile, fc1_width

    # Hoist the loop-invariant recurrent weight load out of the time loop.
    whh_t = whh_t_ref[...]                                     # (H, 4H)

    # ---- sequential LSTM recurrence. Only h @ W_hh^T is on the critical path;
    #      x @ W_ih^T + bias was precomputed for all timesteps (xproj_ref).
    def step(t, carry):
        h, c = carry
        row = pl.multiple_of(t * TB, TB)
        gates = xproj_ref[pl.ds(row, TB), :] + jnp.dot(
            h, whh_t, preferred_element_type=jnp.float32)      # (TB, 4H), order [i,f,g,o]
        i_g = jax.nn.sigmoid(gates[:, 0 * H:1 * H])
        f_g = jax.nn.sigmoid(gates[:, 1 * H:2 * H])
        g_g = jnp.tanh(gates[:, 2 * H:3 * H])
        o_g = jax.nn.sigmoid(gates[:, 3 * H:4 * H])
        c = f_g * c + i_g * g_g
        h = o_g * jnp.tanh(c)
        h_slab[pl.ds(row, TB), :] = h                          # (TB, H) -> hidden slab
        return h, c

    h0 = jnp.zeros((TB, H), jnp.float32)
    c0 = jnp.zeros((TB, H), jnp.float32)
    jax.lax.fori_loop(0, T, step, (h0, c0), unroll=(T <= 64))

    # ---- fc1/fc2 fused over the whole hidden slab (dense matmuls, single store).
    # fc1 split: combined @ W1^T == h @ W1_h^T + static @ W1_s^T; the static part
    # is constant over time so it is computed once and tiled over T.
    stat_term = jnp.dot(stat_ref[...], w1s_t_ref[...],
                        preferred_element_type=jnp.float32) + b1_ref[...]   # (TB, FH)
    stat_full = jnp.tile(stat_term, (T, 1))                                 # (T*TB, FH)

    z = jnp.maximum(
        jnp.dot(h_slab[...], w1h_t_ref[...], preferred_element_type=jnp.float32)
        + stat_full, 0.0)                                                   # (T*TB, FH)
    out = jnp.dot(z, w2_t_ref[...], preferred_element_type=jnp.float32) + b2_ref[...]
    out_ref[...] = out.astype(out_ref.dtype)                                # (T*TB, O)


def custom_lstm_model_forward(x, static_params, params, *, batch_tile=8):
    """x: (B, T, input_size); static_params: (B, n_static). Returns (B, T, output_size)."""
    B, T, D = x.shape
    S = static_params.shape[-1]
    H = params["hidden_size"]
    FH = params["w1"].shape[0]            # fc1 width (32)
    O = params["w2"].shape[0]

    TB = batch_tile                       # sublane multiple (f32)
    ntiles = pl.cdiv(B, TB)
    B_pad = ntiles * TB

    wih_t = params["w_ih"].T.astype(jnp.float32)                    # (D, 4H)
    whh_t = params["w_hh"].T.astype(jnp.float32)                    # (H, 4H)
    bias = (params["b_ih"] + params["b_hh"]).astype(jnp.float32)    # (4H,)
    w1 = params["w1"].astype(jnp.float32)                           # (FH, H+S)
    w1h_t = w1[:, :H].T                                             # (H, FH)
    w1s_t = w1[:, H:].T                                             # (S, FH)
    b1 = params["b1"].reshape(1, -1).astype(jnp.float32)            # (1, FH)
    w2_t = params["w2"].T.astype(jnp.float32)                       # (FH, O)
    b2 = params["b2"].reshape(1, -1).astype(jnp.float32)            # (1, O)

    # Non-recurrent input projection for all timesteps: one big matmul + bias fold.
    xproj = jnp.einsum("btd,dg->btg", x.astype(jnp.float32), wih_t) + bias   # (B, T, 4H)

    static_f = static_params.astype(jnp.float32)
    if B_pad != B:
        xproj = jnp.pad(xproj, ((0, B_pad - B), (0, 0), (0, 0)))
        static_f = jnp.pad(static_f, ((0, B_pad - B), (0, 0)))

    # Pack per batch tile; time-major within a tile: row = t*TB + local_batch.
    xproj_tiles = (xproj.reshape(ntiles, TB, T, 4 * H)
                   .transpose(0, 2, 1, 3)
                   .reshape(ntiles, T * TB, 4 * H))
    stat_tiles = static_f.reshape(ntiles, TB, S)

    kernel = functools.partial(_lstm_mlp_kernel, hidden_size=H, seq_len=T,
                               batch_tile=TB, fc1_width=FH)
    const2d = lambda shape: pl.BlockSpec(shape, lambda g: (0, 0))

    out_tiles = pl.pallas_call(
        kernel,
        out_shape=jax.ShapeDtypeStruct((ntiles, T * TB, O), jnp.float32),
        grid=(ntiles,),
        in_specs=[
            pl.BlockSpec((None, T * TB, 4 * H), lambda g: (g, 0, 0)),   # x projection slab
            pl.BlockSpec((None, TB, S), lambda g: (g, 0, 0)),           # static predictors
            const2d((H, 4 * H)),                                        # W_hh^T
            const2d((H, FH)),                                           # W1_h^T
            const2d((S, FH)),                                           # W1_s^T
            const2d((1, FH)),                                           # b1
            const2d((FH, O)),                                           # W2^T
            const2d((1, O)),                                            # b2
        ],
        out_specs=pl.BlockSpec((None, T * TB, O), lambda g: (g, 0, 0)),
        scratch_shapes=[pltpu.VMEM((T * TB, H), jnp.float32)],          # hidden-state slab
        compiler_params=pltpu.CompilerParams(
            dimension_semantics=("parallel",)),                         # batch tiles independent
    )(xproj_tiles, stat_tiles, whh_t, w1h_t, w1s_t, b1, w2_t, b2)

    out = (out_tiles.reshape(ntiles, T, TB, O)
           .transpose(0, 2, 1, 3)
           .reshape(B_pad, T, O))
    return out[:B]                                                      # (B, T, O)


def _reference_forward(x, static_params, params):
    """Pure-JAX reference (mirrors torch nn.LSTM + fc layers)."""
    H = params["hidden_size"]
    w_ih, w_hh = params["w_ih"], params["w_hh"]
    b = params["b_ih"] + params["b_hh"]

    def step(carry, x_t):
        h, c = carry
        gates = x_t @ w_ih.T + h @ w_hh.T + b
        i = jax.nn.sigmoid(gates[:, 0 * H:1 * H])
        f = jax.nn.sigmoid(gates[:, 1 * H:2 * H])
        g = jnp.tanh(gates[:, 2 * H:3 * H])
        o = jax.nn.sigmoid(gates[:, 3 * H:4 * H])
        c = f * c + i * g
        h = o * jnp.tanh(c)
        return (h, c), h

    B = x.shape[0]
    h0 = jnp.zeros((B, H), jnp.float32)
    (_, _), hs = jax.lax.scan(step, (h0, h0), jnp.transpose(x, (1, 0, 2)))
    lstm_out = jnp.transpose(hs, (1, 0, 2))                       # (B, T, H)
    T = lstm_out.shape[1]
    stat_rep = jnp.repeat(static_params[:, None, :], T, axis=1)
    combined = jnp.concatenate([lstm_out, stat_rep], axis=-1)
    z = jnp.maximum(combined @ params["w1"].T + params["b1"], 0.0)
    return z @ params["w2"].T + params["b2"]


def _init_params(key, input_size, hidden_size, output_size, n_static):
    ks = jax.random.split(key, 8)
    scale = 1.0 / jnp.sqrt(hidden_size)
    u = lambda k, shape: jax.random.uniform(k, shape, jnp.float32, -scale, scale)
    return {
        "hidden_size": hidden_size,
        "w_ih": u(ks[0], (4 * hidden_size, input_size)),
        "w_hh": u(ks[1], (4 * hidden_size, hidden_size)),
        "b_ih": u(ks[2], (4 * hidden_size,)),
        "b_hh": u(ks[3], (4 * hidden_size,)),
        "w1": u(ks[4], (32, hidden_size + n_static)),
        "b1": u(ks[5], (32,)),
        "w2": u(ks[6], (output_size, 32)),
        "b2": u(ks[7], (output_size,)),
    }


if __name__ == "__main__":
    # x: (batch, seq, input_size), static_params: (batch, number_static_predictors)
    B, T, D, H, S, O = 2, 8, 4, 32, 4, 1

    key = jax.random.PRNGKey(0)
    kx, ks_, kp = jax.random.split(key, 3)
    x = jax.random.normal(kx, (B, T, D), jnp.float32)
    static_params = jax.random.normal(ks_, (B, S), jnp.float32)
    params = _init_params(kp, D, H, O, S)

    out = jax.block_until_ready(custom_lstm_model_forward(x, static_params, params))
    ref = _reference_forward(x, static_params, params)

    assert out.shape == (B, T, O), out.shape
    assert jnp.allclose(out, ref, atol=1e-4, rtol=1e-4), float(jnp.max(jnp.abs(out - ref)))
    print("KERNEL_OK")
</pallas_src>

<mosaic_0001>
module attributes {stable_mosaic.version = 11 : i64} {
  func.func @_lstm_mlp_kernel(%arg0: i32, %arg1: memref<1x64x128xf32, #tpu.memory_space<vmem>>, %arg2: memref<1x8x4xf32, #tpu.memory_space<vmem>>, %arg3: memref<32x128xf32, #tpu.memory_space<vmem>>, %arg4: memref<32x32xf32, #tpu.memory_space<vmem>>, %arg5: memref<4x32xf32, #tpu.memory_space<vmem>>, %arg6: memref<1x32xf32, #tpu.memory_space<vmem>>, %arg7: memref<32x1xf32, #tpu.memory_space<vmem>>, %arg8: memref<1x1xf32, #tpu.memory_space<vmem>>, %arg9: memref<1x64x1xf32, #tpu.memory_space<vmem>>, %arg10: memref<64x32xf32, #tpu.memory_space<vmem>>) attributes {dimension_semantics = [#tpu.dimension_semantics<parallel>], iteration_bounds = array<i64: 1>, scalar_prefetch = 0 : i64, scratch_operands = 1 : i64, tpu.core_type = #tpu.core_type<tc>, window_params = [{transform_indices = @transform_0, window_bounds = array<i64: 1, 64, 128>}, {transform_indices = @transform_1, window_bounds = array<i64: 1, 8, 4>}, {pipeline_mode = #tpu.pipeline_mode<synchronous>, transform_indices = @transform_2, window_bounds = array<i64: 32, 128>}, {pipeline_mode = #tpu.pipeline_mode<synchronous>, transform_indices = @transform_3, window_bounds = array<i64: 32, 32>}, {pipeline_mode = #tpu.pipeline_mode<synchronous>, transform_indices = @transform_4, window_bounds = array<i64: 4, 32>}, {pipeline_mode = #tpu.pipeline_mode<synchronous>, transform_indices = @transform_5, window_bounds = array<i64: 1, 32>}, {pipeline_mode = #tpu.pipeline_mode<synchronous>, transform_indices = @transform_6, window_bounds = array<i64: 32, 1>}, {pipeline_mode = #tpu.pipeline_mode<synchronous>, transform_indices = @transform_7, window_bounds = array<i64: 1, 1>}, {transform_indices = @transform_8, window_bounds = array<i64: 1, 64, 1>}]} {
    %c0 = arith.constant 0 : index
    %c0_0 = arith.constant 0 : index
    %0 = vector.load %arg3[%c0, %c0_0] : memref<32x128xf32, #tpu.memory_space<vmem>>, vector<32x128xf32>
    %cst = arith.constant 0.000000e+00 : f32
    %1 = vector.broadcast %cst : f32 to vector<8x32xf32>
    %cst_1 = arith.constant 0.000000e+00 : f32
    %2 = vector.broadcast %cst_1 : f32 to vector<8x32xf32>
    %c0_i32 = arith.constant 0 : i32
    %c8_i32 = arith.constant 8 : i32
    %3 = arith.muli %c0_i32, %c8_i32 : i32
    %4 = tpu.assume_multiple %3, 8 : i32
    %c0_2 = arith.constant 0 : index
    %5 = arith.index_cast %4 : i32 to index
    %c0_3 = arith.constant 0 : index
    %6 = vector.load %arg1[%c0_2, %5, %c0_3] : memref<1x64x128xf32, #tpu.memory_space<vmem>>, vector<1x8x128xf32>
    %7 = vector.shape_cast %6 : vector<1x8x128xf32> to vector<8x128xf32>
    %cst_4 = arith.constant dense<0.000000e+00> : vector<8x128xf32>
    %8 = tpu.matmul %1, %0, %cst_4 {dimension_numbers = #tpu.dot_dimension_numbers<[1], [0], [0], [1], [0, 0, 1, 1], [], []>} : vector<8x32xf32>, vector<32x128xf32>, vector<8x128xf32> -> vector<8x128xf32>
    %9 = arith.addf %7, %8 : vector<8x128xf32>
    %10 = vector.extract_strided_slice %9 {offsets = [0, 0], sizes = [8, 32], strides = [1, 1]} : vector<8x128xf32> to vector<8x32xf32>
    %11 = arith.negf %10 : vector<8x32xf32>
    %12 = math.exp %11 : vector<8x32xf32>
    %cst_5 = arith.constant 1.000000e+00 : f32
    %13 = vector.broadcast %cst_5 : f32 to vector<8x32xf32>
    %14 = arith.addf %13, %12 : vector<8x32xf32>
    %15 = arith.divf %13, %14 : vector<8x32xf32>
    %16 = vector.extract_strided_slice %9 {offsets = [0, 32], sizes = [8, 32], strides = [1, 1]} : vector<8x128xf32> to vector<8x32xf32>
    %17 = arith.negf %16 : vector<8x32xf32>
    %18 = math.exp %17 : vector<8x32xf32>
    %cst_6 = arith.constant 1.000000e+00 : f32
    %19 = vector.broadcast %cst_6 : f32 to vector<8x32xf32>
    %20 = arith.addf %19, %18 : vector<8x32xf32>
    %21 = arith.divf %19, %20 : vector<8x32xf32>
    %22 = vector.extract_strided_slice %9 {offsets = [0, 64], sizes = [8, 32], strides = [1, 1]} : vector<8x128xf32> to vector<8x32xf32>
    %23 = math.tanh %22 : vector<8x32xf32>
    %24 = vector.extract_strided_slice %9 {offsets = [0, 96], sizes = [8, 32], strides = [1, 1]} : vector<8x128xf32> to vector<8x32xf32>
    %25 = arith.negf %24 : vector<8x32xf32>
    %26 = math.exp %25 : vector<8x32xf32>
    %cst_7 = arith.constant 1.000000e+00 : f32
    %27 = vector.broadcast %cst_7 : f32 to vector<8x32xf32>
    %28 = arith.addf %27, %26 : vector<8x32xf32>
    %29 = arith.divf %27, %28 : vector<8x32xf32>
    %30 = arith.mulf %21, %2 : vector<8x32xf32>
    %31 = arith.mulf %15, %23 : vector<8x32xf32>
    %32 = arith.addf %30, %31 : vector<8x32xf32>
    %33 = math.tanh %32 : vector<8x32xf32>
    %34 = arith.mulf %29, %33 : vector<8x32xf32>
    %35 = arith.index_cast %4 : i32 to index
    %c0_8 = arith.constant 0 : index
    %36 = vector.load %arg10[%35, %c0_8] : memref<64x32xf32, #tpu.memory_space<vmem>>, vector<8x32xf32>
    tpu.vector_store %arg10[%35, %c0_8], %34 {strides = array<i32>} : memref<64x32xf32, #tpu.memory_space<vmem>>, vector<8x32xf32>,
    %c1_i32 = arith.constant 1 : i32
    %c8_i32_9 = arith.constant 8 : i32
    %37 = arith.muli %c1_i32, %c8_i32_9 : i32
    %38 = tpu.assume_multiple %37, 8 : i32
    %c0_10 = arith.constant 0 : index
    %39 = arith.index_cast %38 : i32 to index
    %c0_11 = arith.constant 0 : index
    %40 = vector.load %arg1[%c0_10, %39, %c0_11] : memref<1x64x128xf32, #tpu.memory_space<vmem>>, vector<1x8x128xf32>
    %41 = vector.shape_cast %40 : vector<1x8x128xf32> to vector<8x128xf32>
    %cst_12 = arith.constant dense<0.000000e+00> : vector<8x128xf32>
    %42 = tpu.matmul %34, %0, %cst_12 {dimension_numbers = #tpu.dot_dimension_numbers<[1], [0], [0], [1], [0, 0, 1, 1], [], []>} : vector<8x32xf32>, vector<32x128xf32>, vector<8x128xf32> -> vector<8x128xf32>
    %43 = arith.addf %41, %42 : vector<8x128xf32>
    %44 = vector.extract_strided_slice %43 {offsets = [0, 0], sizes = [8, 32], strides = [1, 1]} : vector<8x128xf32> to vector<8x32xf32>
    %45 = arith.negf %44 : vector<8x32xf32>
    %46 = math.exp %45 : vector<8x32xf32>
    %cst_13 = arith.constant 1.000000e+00 : f32
    %47 = vector.broadcast %cst_13 : f32 to vector<8x32xf32>
    %48 = arith.addf %47, %46 : vector<8x32xf32>
    %49 = arith.divf %47, %48 : vector<8x32xf32>
    %50 = vector.extract_strided_slice %43 {offsets = [0, 32], sizes = [8, 32], strides = [1, 1]} : vector<8x128xf32> to vector<8x32xf32>
    %51 = arith.negf %50 : vector<8x32xf32>
    %52 = math.exp %51 : vector<8x32xf32>
    %cst_14 = arith.constant 1.000000e+00 : f32
    %53 = vector.broadcast %cst_14 : f32 to vector<8x32xf32>
    %54 = arith.addf %53, %52 : vector<8x32xf32>
    %55 = arith.divf %53, %54 : vector<8x32xf32>
    %56 = vector.extract_strided_slice %43 {offsets = [0, 64], sizes = [8, 32], strides = [1, 1]} : vector<8x128xf32> to vector<8x32xf32>
    %57 = math.tanh %56 : vector<8x32xf32>
    %58 = vector.extract_strided_slice %43 {offsets = [0, 96], sizes = [8, 32], strides = [1, 1]} : vector<8x128xf32> to vector<8x32xf32>
    %59 = arith.negf %58 : vector<8x32xf32>
    %60 = math.exp %59 : vector<8x32xf32>
    %cst_15 = arith.constant 1.000000e+00 : f32
    %61 = vector.broadcast %cst_15 : f32 to vector<8x32xf32>
    %62 = arith.addf %61, %60 : vector<8x32xf32>
    %63 = arith.divf %61, %62 : vector<8x32xf32>
    %64 = arith.mulf %55, %32 : vector<8x32xf32>
    %65 = arith.mulf %49, %57 : vector<8x32xf32>
    %66 = arith.addf %64, %65 : vector<8x32xf32>
    %67 = math.tanh %66 : vector<8x32xf32>
    %68 = arith.mulf %63, %67 : vector<8x32xf32>
    %69 = arith.index_cast %38 : i32 to index
    %c0_16 = arith.constant 0 : index
    %70 = vector.load %arg10[%69, %c0_16] : memref<64x32xf32, #tpu.memory_space<vmem>>, vector<8x32xf32>
    tpu.vector_store %arg10[%69, %c0_16], %68 {strides = array<i32>} : memref<64x32xf32, #tpu.memory_space<vmem>>, vector<8x32xf32>,
    %c2_i32 = arith.constant 2 : i32
    %c8_i32_17 = arith.constant 8 : i32
    %71 = arith.muli %c2_i32, %c8_i32_17 : i32
    %72 = tpu.assume_multiple %71, 8 : i32
    %c0_18 = arith.constant 0 : index
    %73 = arith.index_cast %72 : i32 to index
    %c0_19 = arith.constant 0 : index
    %74 = vector.load %arg1[%c0_18, %73, %c0_19] : memref<1x64x128xf32, #tpu.memory_space<vmem>>, vector<1x8x128xf32>
    %75 = vector.shape_cast %74 : vector<1x8x128xf32> to vector<8x128xf32>
    %cst_20 = arith.constant dense<0.000000e+00> : vector<8x128xf32>
    %76 = tpu.matmul %68, %0, %cst_20 {dimension_numbers = #tpu.dot_dimension_numbers<[1], [0], [0], [1], [0, 0, 1, 1], [], []>} : vector<8x32xf32>, vector<32x128xf32>, vector<8x128xf32> -> vector<8x128xf32>
    %77 = arith.addf %75, %76 : vector<8x128xf32>
    %78 = vector.extract_strided_slice %77 {offsets = [0, 0], sizes = [8, 32], strides = [1, 1]} : vector<8x128xf32> to vector<8x32xf32>
    %79 = arith.negf %78 : vector<8x32xf32>
    %80 = math.exp %79 : vector<8x32xf32>
    %cst_21 = arith.constant 1.000000e+00 : f32
    %81 = vector.broadcast %cst_21 : f32 to vector<8x32xf32>
    %82 = arith.addf %81, %80 : vector<8x32xf32>
    %83 = arith.divf %81, %82 : vector<8x32xf32>
    %84 = vector.extract_strided_slice %77 {offsets = [0, 32], sizes = [8, 32], strides = [1, 1]} : vector<8x128xf32> to vector<8x32xf32>
    %85 = arith.negf %84 : vector<8x32xf32>
    %86 = math.exp %85 : vector<8x32xf32>
    %cst_22 = arith.constant 1.000000e+00 : f32
    %87 = vector.broadcast %cst_22 : f32 to vector<8x32xf32>
    %88 = arith.addf %87, %86 : vector<8x32xf32>
    %89 = arith.divf %87, %88 : vector<8x32xf32>
    %90 = vector.extract_strided_slice %77 {offsets = [0, 64], sizes = [8, 32], strides = [1, 1]} : vector<8x128xf32> to vector<8x32xf32>
    %91 = math.tanh %90 : vector<8x32xf32>
    %92 = vector.extract_strided_slice %77 {offsets = [0, 96], sizes = [8, 32], strides = [1, 1]} : vector<8x128xf32> to vector<8x32xf32>
    %93 = arith.negf %92 : vector<8x32xf32>
    %94 = math.exp %93 : vector<8x32xf32>
    %cst_23 = arith.constant 1.000000e+00 : f32
    %95 = vector.broadcast %cst_23 : f32 to vector<8x32xf32>
    %96 = arith.addf %95, %94 : vector<8x32xf32>
    %97 = arith.divf %95, %96 : vector<8x32xf32>
    %98 = arith.mulf %89, %66 : vector<8x32xf32>
    %99 = arith.mulf %83, %91 : vector<8x32xf32>
    %100 = arith.addf %98, %99 : vector<8x32xf32>
    %101 = math.tanh %100 : vector<8x32xf32>
    %102 = arith.mulf %97, %101 : vector<8x32xf32>
    %103 = arith.index_cast %72 : i32 to index
    %c0_24 = arith.constant 0 : index
    %104 = vector.load %arg10[%103, %c0_24] : memref<64x32xf32, #tpu.memory_space<vmem>>, vector<8x32xf32>
    tpu.vector_store %arg10[%103, %c0_24], %102 {strides = array<i32>} : memref<64x32xf32, #tpu.memory_space<vmem>>, vector<8x32xf32>,
    %c3_i32 = arith.constant 3 : i32
    %c8_i32_25 = arith.constant 8 : i32
    %105 = arith.muli %c3_i32, %c8_i32_25 : i32
    %106 = tpu.assume_multiple %105, 8 : i32
    %c0_26 = arith.constant 0 : index
    %107 = arith.index_cast %106 : i32 to index
    %c0_27 = arith.constant 0 : index
    %108 = vector.load %arg1[%c0_26, %107, %c0_27] : memref<1x64x128xf32, #tpu.memory_space<vmem>>, vector<1x8x128xf32>
    %109 = vector.shape_cast %108 : vector<1x8x128xf32> to vector<8x128xf32>
    %cst_28 = arith.constant dense<0.000000e+00> : vector<8x128xf32>
    %110 = tpu.matmul %102, %0, %cst_28 {dimension_numbers = #tpu.dot_dimension_numbers<[1], [0], [0], [1], [0, 0, 1, 1], [], []>} : vector<8x32xf32>, vector<32x128xf32>, vector<8x128xf32> -> vector<8x128xf32>
    %111 = arith.addf %109, %110 : vector<8x128xf32>
    %112 = vector.extract_strided_slice %111 {offsets = [0, 0], sizes = [8, 32], strides = [1, 1]} : vector<8x128xf32> to vector<8x32xf32>
    %113 = arith.negf %112 : vector<8x32xf32>
    %114 = math.exp %113 : vector<8x32xf32>
    %cst_29 = arith.constant 1.000000e+00 : f32
    %115 = vector.broadcast %cst_29 : f32 to vector<8x32xf32>
    %116 = arith.addf %115, %114 : vector<8x32xf32>
    %117 = arith.divf %115, %116 : vector<8x32xf32>
    %118 = vector.extract_strided_slice %111 {offsets = [0, 32], sizes = [8, 32], strides = [1, 1]} : vector<8x128xf32> to vector<8x32xf32>
    %119 = arith.negf %118 : vector<8x32xf32>
    %120 = math.exp %119 : vector<8x32xf32>
    %cst_30 = arith.constant 1.000000e+00 : f32
    %121 = vector.broadcast %cst_30 : f32 to vector<8x32xf32>
    %122 = arith.addf %121, %120 : vector<8x32xf32>
    %123 = arith.divf %121, %122 : vector<8x32xf32>
    %124 = vector.extract_strided_slice %111 {offsets = [0, 64], sizes = [8, 32], strides = [1, 1]} : vector<8x128xf32> to vector<8x32xf32>
    %125 = math.tanh %124 : vector<8x32xf32>
    %126 = vector.extract_strided_slice %111 {offsets = [0, 96], sizes = [8, 32], strides = [1, 1]} : vector<8x128xf32> to vector<8x32xf32>
    %127 = arith.negf %126 : vector<8x32xf32>
    %128 = math.exp %127 : vector<8x32xf32>
    %cst_31 = arith.constant 1.000000e+00 : f32
    %129 = vector.broadcast %cst_31 : f32 to vector<8x32xf32>
    %130 = arith.addf %129, %128 : vector<8x32xf32>
    %131 = arith.divf %129, %130 : vector<8x32xf32>
    %132 = arith.mulf %123, %100 : vector<8x32xf32>
    %133 = arith.mulf %117, %125 : vector<8x32xf32>
    %134 = arith.addf %132, %133 : vector<8x32xf32>
    %135 = math.tanh %134 : vector<8x32xf32>
    %136 = arith.mulf %131, %135 : vector<8x32xf32>
    %137 = arith.index_cast %106 : i32 to index
    %c0_32 = arith.constant 0 : index
    %138 = vector.load %arg10[%137, %c0_32] : memref<64x32xf32, #tpu.memory_space<vmem>>, vector<8x32xf32>
    tpu.vector_store %arg10[%137, %c0_32], %136 {strides = array<i32>} : memref<64x32xf32, #tpu.memory_space<vmem>>, vector<8x32xf32>,
    %c4_i32 = arith.constant 4 : i32
    %c8_i32_33 = arith.constant 8 : i32
    %139 = arith.muli %c4_i32, %c8_i32_33 : i32
    %140 = tpu.assume_multiple %139, 8 : i32
    %c0_34 = arith.constant 0 : index
    %141 = arith.index_cast %140 : i32 to index
    %c0_35 = arith.constant 0 : index
    %142 = vector.load %arg1[%c0_34, %141, %c0_35] : memref<1x64x128xf32, #tpu.memory_space<vmem>>, vector<1x8x128xf32>
    %143 = vector.shape_cast %142 : vector<1x8x128xf32> to vector<8x128xf32>
    %cst_36 = arith.constant dense<0.000000e+00> : vector<8x128xf32>
    %144 = tpu.matmul %136, %0, %cst_36 {dimension_numbers = #tpu.dot_dimension_numbers<[1], [0], [0], [1], [0, 0, 1, 1], [], []>} : vector<8x32xf32>, vector<32x128xf32>, vector<8x128xf32> -> vector<8x128xf32>
    %145 = arith.addf %143, %144 : vector<8x128xf32>
    %146 = vector.extract_strided_slice %145 {offsets = [0, 0], sizes = [8, 32], strides = [1, 1]} : vector<8x128xf32> to vector<8x32xf32>
    %147 = arith.negf %146 : vector<8x32xf32>
    %148 = math.exp %147 : vector<8x32xf32>
    %cst_37 = arith.constant 1.000000e+00 : f32
    %149 = vector.broadcast %cst_37 : f32 to vector<8x32xf32>
    %150 = arith.addf %149, %148 : vector<8x32xf32>
    %151 = arith.divf %149, %150 : vector<8x32xf32>
    %152 = vector.extract_strided_slice %145 {offsets = [0, 32], sizes = [8, 32], strides = [1, 1]} : vector<8x128xf32> to vector<8x32xf32>
    %153 = arith.negf %152 : vector<8x32xf32>
    %154 = math.exp %153 : vector<8x32xf32>
    %cst_38 = arith.constant 1.000000e+00 : f32
    %155 = vector.broadcast %cst_38 : f32 to vector<8x32xf32>
    %156 = arith.addf %155, %154 : vector<8x32xf32>
    %157 = arith.divf %155, %156 : vector<8x32xf32>
    %158 = vector.extract_strided_slice %145 {offsets = [0, 64], sizes = [8, 32], strides = [1, 1]} : vector<8x128xf32> to vector<8x32xf32>
    %159 = math.tanh %158 : vector<8x32xf32>
    %160 = vector.extract_strided_slice %145 {offsets = [0, 96], sizes = [8, 32], strides = [1, 1]} : vector<8x128xf32> to vector<8x32xf32>
    %161 = arith.negf %160 : vector<8x32xf32>
    %162 = math.exp %161 : vector<8x32xf32>
    %cst_39 = arith.constant 1.000000e+00 : f32
    %163 = vector.broadcast %cst_39 : f32 to vector<8x32xf32>
    %164 = arith.addf %163, %162 : vector<8x32xf32>
    %165 = arith.divf %163, %164 : vector<8x32xf32>
    %166 = arith.mulf %157, %134 : vector<8x32xf32>
    %167 = arith.mulf %151, %159 : vector<8x32xf32>
    %168 = arith.addf %166, %167 : vector<8x32xf32>
    %169 = math.tanh %168 : vector<8x32xf32>
    %170 = arith.mulf %165, %169 : vector<8x32xf32>
    %171 = arith.index_cast %140 : i32 to index
    %c0_40 = arith.constant 0 : index
    %172 = vector.load %arg10[%171, %c0_40] : memref<64x32xf32, #tpu.memory_space<vmem>>, vector<8x32xf32>
    tpu.vector_store %arg10[%171, %c0_40], %170 {strides = array<i32>} : memref<64x32xf32, #tpu.memory_space<vmem>>, vector<8x32xf32>,
    %c5_i32 = arith.constant 5 : i32
    %c8_i32_41 = arith.constant 8 : i32
    %173 = arith.muli %c5_i32, %c8_i32_41 : i32
    %174 = tpu.assume_multiple %173, 8 : i32
    %c0_42 = arith.constant 0 : index
    %175 = arith.index_cast %174 : i32 to index
    %c0_43 = arith.constant 0 : index
    %176 = vector.load %arg1[%c0_42, %175, %c0_43] : memref<1x64x128xf32, #tpu.memory_space<vmem>>, vector<1x8x128xf32>
    %177 = vector.shape_cast %176 : vector<1x8x128xf32> to vector<8x128xf32>
    %cst_44 = arith.constant dense<0.000000e+00> : vector<8x128xf32>
    %178 = tpu.matmul %170, %0, %cst_44 {dimension_numbers = #tpu.dot_dimension_numbers<[1], [0], [0], [1], [0, 0, 1, 1], [], []>} : vector<8x32xf32>, vector<32x128xf32>, vector<8x128xf32> -> vector<8x128xf32>
    %179 = arith.addf %177, %178 : vector<8x128xf32>
    %180 = vector.extract_strided_slice %179 {offsets = [0, 0], sizes = [8, 32], strides = [1, 1]} : vector<8x128xf32> to vector<8x32xf32>
    %181 = arith.negf %180 : vector<8x32xf32>
    %182 = math.exp %181 : vector<8x32xf32>
    %cst_45 = arith.constant 1.000000e+00 : f32
    %183 = vector.broadcast %cst_45 : f32 to vector<8x32xf32>
    %184 = arith.addf %183, %182 : vector<8x32xf32>
    %185 = arith.divf %183, %184 : vector<8x32xf32>
    %186 = vector.extract_strided_slice %179 {offsets = [0, 32], sizes = [8, 32], strides = [1, 1]} : vector<8x128xf32> to vector<8x32xf32>
    %187 = arith.negf %186 : vector<8x32xf32>
    %188 = math.exp %187 : vector<8x32xf32>
    %cst_46 = arith.constant 1.000000e+00 : f32
    %189 = vector.broadcast %cst_46 : f32 to vector<8x32xf32>
    %190 = arith.addf %189, %188 : vector<8x32xf32>
    %191 = arith.divf %189, %190 : vector<8x32xf32>
    %192 = vector.extract_strided_slice %179 {offsets = [0, 64], sizes = [8, 32], strides = [1, 1]} : vector<8x128xf32> to vector<8x32xf32>
    %193 = math.tanh %192 : vector<8x32xf32>
    %194 = vector.extract_strided_slice %179 {offsets = [0, 96], sizes = [8, 32], strides = [1, 1]} : vector<8x128xf32> to vector<8x32xf32>
    %195 = arith.negf %194 : vector<8x32xf32>
    %196 = math.exp %195 : vector<8x32xf32>
    %cst_47 = arith.constant 1.000000e+00 : f32
    %197 = vector.broadcast %cst_47 : f32 to vector<8x32xf32>
    %198 = arith.addf %197, %196 : vector<8x32xf32>
    %199 = arith.divf %197, %198 : vector<8x32xf32>
    %200 = arith.mulf %191, %168 : vector<8x32xf32>
    %201 = arith.mulf %185, %193 : vector<8x32xf32>
    %202 = arith.addf %200, %201 : vector<8x32xf32>
    %203 = math.tanh %202 : vector<8x32xf32>
    %204 = arith.mulf %199, %203 : vector<8x32xf32>
    %205 = arith.index_cast %174 : i32 to index
    %c0_48 = arith.constant 0 : index
    %206 = vector.load %arg10[%205, %c0_48] : memref<64x32xf32, #tpu.memory_space<vmem>>, vector<8x32xf32>
    tpu.vector_store %arg10[%205, %c0_48], %204 {strides = array<i32>} : memref<64x32xf32, #tpu.memory_space<vmem>>, vector<8x32xf32>,
    %c6_i32 = arith.constant 6 : i32
    %c8_i32_49 = arith.constant 8 : i32
    %207 = arith.muli %c6_i32, %c8_i32_49 : i32
    %208 = tpu.assume_multiple %207, 8 : i32
    %c0_50 = arith.constant 0 : index
    %209 = arith.index_cast %208 : i32 to index
    %c0_51 = arith.constant 0 : index
    %210 = vector.load %arg1[%c0_50, %209, %c0_51] : memref<1x64x128xf32, #tpu.memory_space<vmem>>, vector<1x8x128xf32>
    %211 = vector.shape_cast %210 : vector<1x8x128xf32> to vector<8x128xf32>
    %cst_52 = arith.constant dense<0.000000e+00> : vector<8x128xf32>
    %212 = tpu.matmul %204, %0, %cst_52 {dimension_numbers = #tpu.dot_dimension_numbers<[1], [0], [0], [1], [0, 0, 1, 1], [], []>} : vector<8x32xf32>, vector<32x128xf32>, vector<8x128xf32> -> vector<8x128xf32>
    %213 = arith.addf %211, %212 : vector<8x128xf32>
    %214 = vector.extract_strided_slice %213 {offsets = [0, 0], sizes = [8, 32], strides = [1, 1]} : vector<8x128xf32> to vector<8x32xf32>
    %215 = arith.negf %214 : vector<8x32xf32>
    %216 = math.exp %215 : vector<8x32xf32>
    %cst_53 = arith.constant 1.000000e+00 : f32
    %217 = vector.broadcast %cst_53 : f32 to vector<8x32xf32>
    %218 = arith.addf %217, %216 : vector<8x32xf32>
    %219 = arith.divf %217, %218 : vector<8x32xf32>
    %220 = vector.extract_strided_slice %213 {offsets = [0, 32], sizes = [8, 32], strides = [1, 1]} : vector<8x128xf32> to vector<8x32xf32>
    %221 = arith.negf %220 : vector<8x32xf32>
    %222 = math.exp %221 : vector<8x32xf32>
    %cst_54 = arith.constant 1.000000e+00 : f32
    %223 = vector.broadcast %cst_54 : f32 to vector<8x32xf32>
    %224 = arith.addf %223, %222 : vector<8x32xf32>
    %225 = arith.divf %223, %224 : vector<8x32xf32>
    %226 = vector.extract_strided_slice %213 {offsets = [0, 64], sizes = [8, 32], strides = [1, 1]} : vector<8x128xf32> to vector<8x32xf32>
    %227 = math.tanh %226 : vector<8x32xf32>
    %228 = vector.extract_strided_slice %213 {offsets = [0, 96], sizes = [8, 32], strides = [1, 1]} : vector<8x128xf32> to vector<8x32xf32>
    %229 = arith.negf %228 : vector<8x32xf32>
    %230 = math.exp %229 : vector<8x32xf32>
    %cst_55 = arith.constant 1.000000e+00 : f32
    %231 = vector.broadcast %cst_55 : f32 to vector<8x32xf32>
    %232 = arith.addf %231, %230 : vector<8x32xf32>
    %233 = arith.divf %231, %232 : vector<8x32xf32>
    %234 = arith.mulf %225, %202 : vector<8x32xf32>
    %235 = arith.mulf %219, %227 : vector<8x32xf32>
    %236 = arith.addf %234, %235 : vector<8x32xf32>
    %237 = math.tanh %236 : vector<8x32xf32>
    %238 = arith.mulf %233, %237 : vector<8x32xf32>
    %239 = arith.index_cast %208 : i32 to index
    %c0_56 = arith.constant 0 : index
    %240 = vector.load %arg10[%239, %c0_56] : memref<64x32xf32, #tpu.memory_space<vmem>>, vector<8x32xf32>
    tpu.vector_store %arg10[%239, %c0_56], %238 {strides = array<i32>} : memref<64x32xf32, #tpu.memory_space<vmem>>, vector<8x32xf32>,
    %c7_i32 = arith.constant 7 : i32
    %c8_i32_57 = arith.constant 8 : i32
    %241 = arith.muli %c7_i32, %c8_i32_57 : i32
    %242 = tpu.assume_multiple %241, 8 : i32
    %c0_58 = arith.constant 0 : index
    %243 = arith.index_cast %242 : i32 to index
    %c0_59 = arith.constant 0 : index
    %244 = vector.load %arg1[%c0_58, %243, %c0_59] : memref<1x64x128xf32, #tpu.memory_space<vmem>>, vector<1x8x128xf32>
    %245 = vector.shape_cast %244 : vector<1x8x128xf32> to vector<8x128xf32>
    %cst_60 = arith.constant dense<0.000000e+00> : vector<8x128xf32>
    %246 = tpu.matmul %238, %0, %cst_60 {dimension_numbers = #tpu.dot_dimension_numbers<[1], [0], [0], [1], [0, 0, 1, 1], [], []>} : vector<8x32xf32>, vector<32x128xf32>, vector<8x128xf32> -> vector<8x128xf32>
    %247 = arith.addf %245, %246 : vector<8x128xf32>
    %248 = vector.extract_strided_slice %247 {offsets = [0, 0], sizes = [8, 32], strides = [1, 1]} : vector<8x128xf32> to vector<8x32xf32>
    %249 = arith.negf %248 : vector<8x32xf32>
    %250 = math.exp %249 : vector<8x32xf32>
    %cst_61 = arith.constant 1.000000e+00 : f32
    %251 = vector.broadcast %cst_61 : f32 to vector<8x32xf32>
    %252 = arith.addf %251, %250 : vector<8x32xf32>
    %253 = arith.divf %251, %252 : vector<8x32xf32>
    %254 = vector.extract_strided_slice %247 {offsets = [0, 32], sizes = [8, 32], strides = [1, 1]} : vector<8x128xf32> to vector<8x32xf32>
    %255 = arith.negf %254 : vector<8x32xf32>
    %256 = math.exp %255 : vector<8x32xf32>
    %cst_62 = arith.constant 1.000000e+00 : f32
    %257 = vector.broadcast %cst_62 : f32 to vector<8x32xf32>
    %258 = arith.addf %257, %256 : vector<8x32xf32>
    %259 = arith.divf %257, %258 : vector<8x32xf32>
    %260 = vector.extract_strided_slice %247 {offsets = [0, 64], sizes = [8, 32], strides = [1, 1]} : vector<8x128xf32> to vector<8x32xf32>
    %261 = math.tanh %260 : vector<8x32xf32>
    %262 = vector.extract_strided_slice %247 {offsets = [0, 96], sizes = [8, 32], strides = [1, 1]} : vector<8x128xf32> to vector<8x32xf32>
    %263 = arith.negf %262 : vector<8x32xf32>
    %264 = math.exp %263 : vector<8x32xf32>
    %cst_63 = arith.constant 1.000000e+00 : f32
    %265 = vector.broadcast %cst_63 : f32 to vector<8x32xf32>
    %266 = arith.addf %265, %264 : vector<8x32xf32>
    %267 = arith.divf %265, %266 : vector<8x32xf32>
    %268 = arith.mulf %259, %236 : vector<8x32xf32>
    %269 = arith.mulf %253, %261 : vector<8x32xf32>
    %270 = arith.addf %268, %269 : vector<8x32xf32>
    %271 = math.tanh %270 : vector<8x32xf32>
    %272 = arith.mulf %267, %271 : vector<8x32xf32>
    %273 = arith.index_cast %242 : i32 to index
    %c0_64 = arith.constant 0 : index
    %274 = vector.load %arg10[%273, %c0_64] : memref<64x32xf32, #tpu.memory_space<vmem>>, vector<8x32xf32>
    tpu.vector_store %arg10[%273, %c0_64], %272 {strides = array<i32>} : memref<64x32xf32, #tpu.memory_space<vmem>>, vector<8x32xf32>,
    %c8_i32_65 = arith.constant 8 : i32
    %c0_66 = arith.constant 0 : index
    %c0_67 = arith.constant 0 : index
    %c0_68 = arith.constant 0 : index
    %275 = vector.load %arg2[%c0_66, %c0_67, %c0_68] : memref<1x8x4xf32, #tpu.memory_space<vmem>>, vector<1x8x4xf32>
    %276 = vector.shape_cast %275 : vector<1x8x4xf32> to vector<8x4xf32>
    %c0_69 = arith.constant 0 : index
    %c0_70 = arith.constant 0 : index
    %277 = vector.load %arg5[%c0_69, %c0_70] : memref<4x32xf32, #tpu.memory_space<vmem>>, vector<4x32xf32>
    %cst_71 = arith.constant dense<0.000000e+00> : vector<8x32xf32>
    %278 = tpu.matmul %276, %277, %cst_71 {dimension_numbers = #tpu.dot_dimension_numbers<[1], [0], [0], [1], [0, 0, 1, 1], [], []>} : vector<8x4xf32>, vector<4x32xf32>, vector<8x32xf32> -> vector<8x32xf32>
    %c0_72 = arith.constant 0 : index
    %c0_73 = arith.constant 0 : index
    %279 = vector.load %arg6[%c0_72, %c0_73] : memref<1x32xf32, #tpu.memory_space<vmem>>, vector<1x32xf32>
    %280 = vector.broadcast %279 : vector<1x32xf32> to vector<8x32xf32>
    %281 = arith.addf %278, %280 : vector<8x32xf32>
    %282 = tpu.concatenate %281, %281, %281, %281, %281, %281, %281, %281 in 0 : vector<8x32xf32>, vector<8x32xf32>, vector<8x32xf32>, vector<8x32xf32>, vector<8x32xf32>, vector<8x32xf32>, vector<8x32xf32>, vector<8x32xf32> -> vector<64x32xf32>
    %c0_74 = arith.constant 0 : index
    %c0_75 = arith.constant 0 : index
    %283 = vector.load %arg10[%c0_74, %c0_75] : memref<64x32xf32, #tpu.memory_space<vmem>>, vector<64x32xf32>
    %c0_76 = arith.constant 0 : index
    %c0_77 = arith.constant 0 : index
    %284 = vector.load %arg4[%c0_76, %c0_77] : memref<32x32xf32, #tpu.memory_space<vmem>>, vector<32x32xf32>
    %cst_78 = arith.constant dense<0.000000e+00> : vector<64x32xf32>
    %285 = tpu.matmul %283, %284, %cst_78 {dimension_numbers = #tpu.dot_dimension_numbers<[1], [0], [0], [1], [0, 0, 1, 1], [], []>} : vector<64x32xf32>, vector<32x32xf32>, vector<64x32xf32> -> vector<64x32xf32>
    %286 = arith.addf %285, %282 : vector<64x32xf32>
    %cst_79 = arith.constant 0.000000e+00 : f32
    %287 = vector.broadcast %cst_79 : f32 to vector<64x32xf32>
    %288 = arith.maximumf %286, %287 : vector<64x32xf32>
    %c0_80 = arith.constant 0 : index
    %c0_81 = arith.constant 0 : index
    %289 = vector.load %arg7[%c0_80, %c0_81] : memref<32x1xf32, #tpu.memory_space<vmem>>, vector<32x1xf32>
    %cst_82 = arith.constant dense<0.000000e+00> : vector<64x1xf32>
    %290 = tpu.matmul %288, %289, %cst_82 {dimension_numbers = #tpu.dot_dimension_numbers<[1], [0], [0], [1], [0, 0, 1, 1], [], []>} : vector<64x32xf32>, vector<32x1xf32>, vector<64x1xf32> -> vector<64x1xf32>
    %c0_83 = arith.constant 0 : index
    %c0_84 = arith.constant 0 : index
    %291 = vector.load %arg8[%c0_83, %c0_84] : memref<1x1xf32, #tpu.memory_space<vmem>>, vector<1x1xf32>
    %292 = vector.broadcast %291 : vector<1x1xf32> to vector<64x1xf32>
    %293 = arith.addf %290, %292 : vector<64x1xf32>
    %c0_85 = arith.constant 0 : index
    %c0_86 = arith.constant 0 : index
    %c0_87 = arith.constant 0 : index
    %294 = vector.load %arg9[%c0_85, %c0_86, %c0_87] : memref<1x64x1xf32, #tpu.memory_space<vmem>>, vector<1x64x1xf32>
    %295 = vector.shape_cast %294 : vector<1x64x1xf32> to vector<64x1xf32>
    %296 = vector.shape_cast %293 : vector<64x1xf32> to vector<1x64x1xf32>
    tpu.vector_store %arg9[%c0_85, %c0_86, %c0_87], %296 {strides = array<i32>} : memref<1x64x1xf32, #tpu.memory_space<vmem>>, vector<1x64x1xf32>,
    return
  }
  func.func @transform_0(%arg0: i32) -> (i32, i32, i32) {
    %c0_i32 = arith.constant 0 : i32
    %c0_i32_0 = arith.constant 0 : i32
    %c0_i32_1 = arith.constant 0 : i32
    return %arg0, %c0_i32, %c0_i32_0 : i32, i32, i32
  }
  func.func @transform_1(%arg0: i32) -> (i32, i32, i32) {
    %c0_i32 = arith.constant 0 : i32
    %c0_i32_0 = arith.constant 0 : i32
    %c0_i32_1 = arith.constant 0 : i32
    return %arg0, %c0_i32, %c0_i32_0 : i32, i32, i32
  }
  func.func @transform_2(%arg0: i32) -> (i32, i32) {
    %c0_i32 = arith.constant 0 : i32
    %c0_i32_0 = arith.constant 0 : i32
    %c0_i32_1 = arith.constant 0 : i32
    return %c0_i32, %c0_i32_0 : i32, i32
  }
  func.func @transform_3(%arg0: i32) -> (i32, i32) {
    %c0_i32 = arith.constant 0 : i32
    %c0_i32_0 = arith.constant 0 : i32
    %c0_i32_1 = arith.constant 0 : i32
    return %c0_i32, %c0_i32_0 : i32, i32
  }
  func.func @transform_4(%arg0: i32) -> (i32, i32) {
    %c0_i32 = arith.constant 0 : i32
    %c0_i32_0 = arith.constant 0 : i32
    %c0_i32_1 = arith.constant 0 : i32
    return %c0_i32, %c0_i32_0 : i32, i32
  }
  func.func @transform_5(%arg0: i32) -> (i32, i32) {
    %c0_i32 = arith.constant 0 : i32
    %c0_i32_0 = arith.constant 0 : i32
    %c0_i32_1 = arith.constant 0 : i32
    return %c0_i32, %c0_i32_0 : i32, i32
  }
  func.func @transform_6(%arg0: i32) -> (i32, i32) {
    %c0_i32 = arith.constant 0 : i32
    %c0_i32_0 = arith.constant 0 : i32
    %c0_i32_1 = arith.constant 0 : i32
    return %c0_i32, %c0_i32_0 : i32, i32
  }
  func.func @transform_7(%arg0: i32) -> (i32, i32) {
    %c0_i32 = arith.constant 0 : i32
    %c0_i32_0 = arith.constant 0 : i32
    %c0_i32_1 = arith.constant 0 : i32
    return %c0_i32, %c0_i32_0 : i32, i32
  }
  func.func @transform_8(%arg0: i32) -> (i32, i32, i32) {
    %c0_i32 = arith.constant 0 : i32
    %c0_i32_0 = arith.constant 0 : i32
    %c0_i32_1 = arith.constant 0 : i32
    return %arg0, %c0_i32, %c0_i32_0 : i32, i32, i32
  }
}

</mosaic_0001>

<bundles_post_ra>
// kernel: tpu_custom_call.1
= control target key start
LH: loop header
LB: loop body
LE: loop exit
PB: predicated region body
PF: predicated region fallthrough
CT: control target
= control target key end

     0   :  { %s1992_s0 = inlined_call_operand.hbm [shape: f32[1,64,128], index: 0, kind: input, shape index: {}]   ;;  %s1993_s1 = inlined_call_operand.vmem [shape: f32[1,8,4], index: 1, kind: input, shape index: {}]   ;;  %s1994_s2 = inlined_call_operand.vmem [shape: f32[32,128], index: 2, kind: input, shape index: {}]   ;;  %s1995_s3 = inlined_call_operand.hbm [shape: f32[32,32], index: 3, kind: input, shape index: {}]   ;;  %s1996_s4 = inlined_call_operand.vmem [shape: f32[4,32], index: 4, kind: input, shape index: {}]   ;;  %s1997_s5 = inlined_call_operand.vmem [shape: f32[1,32], index: 5, kind: input, shape index: {}]   ;;  %s1998_s6 = inlined_call_operand.vmem [shape: f32[32,1], index: 6, kind: input, shape index: {}]   ;;  %s1999_s7 = inlined_call_operand.<no memory space> [shape: f32[1,1], index: 7, kind: input, shape index: {}]   ;;  %s2000_s8 = inlined_call_operand.vmem [shape: f32[1,64,1], index: 8, kind: output, shape index: {}]  }
   0x1   :  { %v13_v0 = vstv %s1999_s7 }
   0x2   :  { %14 = vst [vmem:[#allocation3] sm:$0x1] %v13_v0 }
   0x3   :  { %15 = vsyncpa [#allocation5], 0 }
   0x4   :  { %16 = vsyncpa [#allocation7], 0  ;;  %s1713_s29 = smov [#allocation4]   ;;  %s1665_s11 = scalar_lea.hbm %s1992_s0, 1024 }
   0x5   :  { %s22_s30 = sshll.u32 %s1713_s29, 4  ;;  %p1666_p0 = scmp.ne.s32.totalorder %s1992_s0, %s1665_s11  ;;  %s23_s30 = int_to_ptr.vmem [resolvable:$true] %s22_s30 }
   0x6   :  { %p1669_p1 = scmp.lt.u32.totalorder %s1665_s11, %s1992_s0 }
   0x8   :  { %p1671_p2 = pnand %p1669_p1, %p1666_p0 }
   0xa   :  { %1674 = shalt.err (!%p1671_p2)
}
   0xb   :  { %s1675_s7 = scalar_lea.vmem %s23_s30, 1024  ;;  %p1680_p4 = scmp.lt.s32.totalorder %s23_s30, %s23_s30 }
   0xc   :  { %p1676_p3 = scmp.ne.s32.totalorder %s23_s30, %s1675_s7  ;;  %p1681_p5 = scmp.lt.s32.totalorder %s1675_s7, %s1675_s7 }
   0xe   :  { %p1682_p6 = por %p1681_p5, %p1680_p4 }
  0x10   :  { %p1683_p7 = pnand %p1682_p6, %p1676_p3 }
  0x12   :  { %1686 = shalt.err (!%p1683_p7)
}
  0x13   :  { %s1714_s16 = smov 128   ;;  %s1715_s17 = smov 8  }
  0x14   :  { %28 = dma.hbm_to_vmem [thread:$0]  %s1992_s0, 1024, %s23_s30, [#allocation5], %s1714_s16, %s1714_s16, %s1715_s17  }
  0x15   :  { %s1716_s20 = smov [#allocation6]   ;;  %s1687_s24 = scalar_lea.hbm %s1995_s3, 512 }
  0x16   :  { %s38_s21 = sshll.u32 %s1716_s20, 4  ;;  %p1688_p8 = scmp.ne.s32.totalorder %s1995_s3, %s1687_s24  ;;  %s39_s21 = int_to_ptr.vmem [resolvable:$true] %s38_s21 }
  0x17   :  { %p1691_p9 = scmp.lt.u32.totalorder %s1687_s24, %s1995_s3 }
  0x19   :  { %p1693_p10 = pnand %p1691_p9, %p1688_p8 }
  0x1b   :  { %1696 = shalt.err (!%p1693_p10)
}
  0x1c   :  { %s1697_s29 = scalar_lea.vmem %s39_s21, 512  ;;  %p1702_p12 = scmp.lt.s32.totalorder %s39_s21, %s39_s21 }
  0x1d   :  { %p1698_p11 = scmp.ne.s32.totalorder %s39_s21, %s1697_s29  ;;  %p1703_p13 = scmp.lt.s32.totalorder %s1697_s29, %s1697_s29 }
  0x1f   :  { %p1704_p0 = por %p1703_p13, %p1702_p12 }
  0x21   :  { %p1705_p1 = pnand %p1704_p0, %p1698_p11 }
  0x23   :  { %1708 = shalt.err (!%p1705_p1)
}
  0x24   :  { %44 = dma.hbm_to_vmem [thread:$0]  %s1995_s3, 512, %s39_s21, [#allocation7], %s1714_s16, %s1714_s16, %s1715_s17  }
  0x25   :  { %1709 = dma.done.wait [#allocation5], 1024  }
  0x26   :  { %1710 = vsyncadd [#allocation5], 4294966272 }
  0x27   :  { %1711 = dma.done.wait [#allocation7], 512  }
  0x28   :  { %1712 = vsyncadd [#allocation7], 4294966784  ;;  %v1717_v1 = vmov 0.0|0.0   ;;  %vm1718_vm0 = vmmov 0   ;;  %v1719_v2 = vmov 0.0   ;;  %v59_v3 = vld [vmem:[%s1994_s2] sm:$0xff] }
  0x29   :  { %1528 = vmatprep.subr.bf16.mxu0 %v1717_v1  ;;  %1403 = vmatprep.mubr.msk.f32.mxu0 %vm1718_vm0, %v1719_v2  ;;  %v60_v4 = vld [vmem:[%s1994_s2 + $0x8] sm:$0xff]  ;;  %v61_v5 = vld [vmem:[%s1994_s2 + $0x10] sm:$0xff]  ;;  %v62_v7 = vld [vmem:[%s1994_s2 + $0x18] sm:$0xff]  ;;  %s1720_s2 = smov 64   ;;  %s1721_s7 = smov 32   ;;  %vm64_vm1 = vcmask 261120  }
  0x2a   :  { %1534 = vmatprep.subr.bf16.mxu1 %v1717_v1  ;;  %1414 = vmatprep.mubr.msk.f32.mxu1 %vm1718_vm0, %v1719_v2  ;;  %v1809_v6 = vpack.c.bf16 %v60_v4, %v59_v3  ;;  %v1815_v8 = vpack.c.bf16 %v62_v7, %v61_v5  ;;  %v63_v9 = vld [vmem:[#allocation4] sm:$0xff]  ;;  %v169_v27 = vld [vmem:[#allocation4 + $0x8] sm:$0xff]  ;;  %v274_v45 = vld [vmem:[#allocation4 + $0x10] sm:$0xff]  ;;  %vm916_vm2 = vcmask 1043456   ;;  %vm912_vm3 = vcmask 31744  }
  0x2b   :  { %v379_v63 = vld [vmem:[#allocation4 + $0x18] sm:$0xff]  ;;  %vm1279_vm4 = vcmask 7168  }
  0x2c   :  { %1530 = vmatpush3.bf16.msra.mxu0 %v1809_v6  ;;  %1536 = vmatpush3.bf16.msra.mxu1 %v1809_v6 }
  0x2d   :  { %1531 = vmatprep.subr.bf16.mxu0 %v1717_v1  ;;  %1537 = vmatprep.subr.bf16.mxu1 %v1717_v1 }
  0x30   :  { %1533 = vmatpush3.bf16.msra.mxu0 %v1815_v8  ;;  %1539 = vmatpush3.bf16.msra.mxu1 %v1815_v8 }
  0x31   :  { %1540 = vmatprep.subr.bf16.mxu0 %v1717_v1  ;;  %1546 = vmatprep.subr.bf16.mxu1 %v1717_v1 }
  0x33   :  { %1404 = vmatmul.mubr.f32.vlgmr.msra.gmra.mrb[0].mxu0 %v1719_v2 }
  0x34   :  { %1542 = vmatpush3.bf16.msra.mxu0 %v1809_v6  ;;  %1425 = vmatprep.mubr.msk.f32.mxu0 %vm1718_vm0, %v1719_v2 }
  0x35   :  { %1543 = vmatprep.subr.bf16.mxu0 %v1717_v1 }
  0x38   :  { %1545 = vmatpush3.bf16.msra.mxu0 %v1815_v8 }
  0x39   :  { %1552 = vmatprep.subr.bf16.mxu0 %v1717_v1 }
 0x106   :  { %v134_v10 = vpop.f32.mrb[0].mxu0 }
 0x107   :  { %v138_v11 = vadd.f32 %v134_v10, %v63_v9  ;;  %v1405_v12 = vpop.f32.mrb[1].mxu0 }
 0x109   :  { %1601 = vtanh.f32 %v138_v11  ;;  %v1294_v14 = vmul.f32 -1.442695, %v138_v11 }
 0x10b   :  { %1603 = vpow2.f32 %v1294_v14 }
 0x113   :  { %v1602_v13 = vpop.eup %1601 }
 0x114   :  { %148 = vrot.lane.b32.xlu0 %v1602_v13, %s1720_s2 }
 0x115   :  { %v1604_v15 = vpop.eup %1603 }
 0x116   :  { %v142_v16 = vadd.f32 1.0, %v1604_v15 }
 0x118   :  { %1605 = vrcp.f32 %v142_v16 }
 0x122   :  { %v1606_v17 = vpop.eup %1605 }
 0x123   :  { %v146_v20 = vmul.f32 0.0, %v1606_v17 }
 0x186   :  { %v149_v18 = vpop.permute.xlu0 %148 }
 0x187   :  { %v151_v19 = vmul.f32 %v1606_v17, %v149_v18 }
 0x189   :  { %153 = vrot.lane.b32.xlu0 %v151_v19, %s1721_s7 }
 0x1fb   :  { %v154_v21 = vpop.permute.xlu0 %153 }
 0x1fc   :  { %v156_v22 = vadd.f32 %v154_v21, %v146_v20  ;;  %v484_v21 = vld [vmem:[#allocation4 + $0x20] sm:$0xff] }
 0x1fe   :  { %1607 = vtanh.f32 %v156_v22 }
 0x208   :  { %v1608_v23 = vpop.eup %1607 }
 0x209   :  { %159 = vrot.lane.b32.xlu1 %v1608_v23, %s1720_s2 }
 0x27b   :  { %v160_v24 = vpop.permute.xlu1 %159 }
 0x27c   :  { %v162_v25 = vmul.f32 %v1606_v17, %v160_v24 }
 0x27e   :  { %164 = vrot.lane.b32.xlu1 %v162_v25, %s1721_s7 }
 0x2f0   :  { %v165_v26 = vpop.permute.xlu1 %164 }
 0x2f1   :  { %167 = vst.msk [vmem:[#allocation2] sm:$0xff] %vm64_vm1, %v165_v26  ;;  %1415 = vmatmul.mubr.msk.f32.vlgmr.msra.gmra.mrb[0].mxu1 %vm64_vm1, %v165_v26 }
 0x2f2   :  { %1548 = vmatpush3.bf16.msra.mxu1 %v1809_v6  ;;  %1436 = vmatprep.mubr.msk.f32.mxu1 %vm1718_vm0, %v1719_v2 }
 0x2f3   :  { %1549 = vmatprep.subr.bf16.mxu1 %v1717_v1 }
 0x2f6   :  { %1551 = vmatpush3.bf16.msra.mxu1 %v1815_v8 }
 0x2f7   :  { %1558 = vmatprep.subr.bf16.mxu1 %v1717_v1 }
 0x3c4   :  { %v238_v28 = vpop.f32.mrb[0].mxu1 }
 0x3c5   :  { %v242_v29 = vadd.f32 %v238_v28, %v169_v27  ;;  %v1416_v30 = vpop.f32.mrb[1].mxu1 }
 0x3c7   :  { %1609 = vtanh.f32 %v242_v29  ;;  %v1296_v32 = vmul.f32 -1.442695, %v242_v29 }
 0x3c9   :  { %1611 = vpow2.f32 %v1296_v32 }
 0x3d1   :  { %v1610_v31 = vpop.eup %1609 }
 0x3d2   :  { %252 = vrot.lane.b32.xlu0 %v1610_v31, %s1720_s2 }
 0x3d3   :  { %v1612_v33 = vpop.eup %1611 }
 0x3d4   :  { %v246_v34 = vadd.f32 1.0, %v1612_v33 }
 0x3d6   :  { %1613 = vrcp.f32 %v246_v34 }
 0x3e0   :  { %v1614_v35 = vpop.eup %1613 }
 0x3e1   :  { %v250_v38 = vmul.f32 %v1614_v35, %v156_v22 }
 0x444   :  { %v253_v36 = vpop.permute.xlu0 %252 }
 0x445   :  { %v255_v37 = vmul.f32 %v1614_v35, %v253_v36 }
 0x447   :  { %257 = vrot.lane.b32.xlu1 %v255_v37, %s1721_s7 }
 0x4b9   :  { %v258_v39 = vpop.permute.xlu1 %257 }
 0x4ba   :  { %v260_v40 = vadd.f32 %v258_v39, %v250_v38  ;;  %v589_v39 = vld [vmem:[#allocation4 + $0x28] sm:$0xff] }
 0x4bc   :  { %1615 = vtanh.f32 %v260_v40 }
 0x4c6   :  { %v1616_v41 = vpop.eup %1615 }
 0x4c7   :  { %263 = vrot.lane.b32.xlu0 %v1616_v41, %s1720_s2 }
 0x539   :  { %v264_v42 = vpop.permute.xlu0 %263 }
 0x53a   :  { %v266_v43 = vmul.f32 %v1614_v35, %v264_v42 }
 0x53c   :  { %268 = vrot.lane.b32.xlu1 %v266_v43, %s1721_s7 }
 0x5ae   :  { %v269_v44 = vpop.permute.xlu1 %268 }
 0x5af   :  { %272 = vst.msk [vmem:[#allocation2 + $0x8] sm:$0xff] %vm64_vm1, %v269_v44  ;;  %1426 = vmatmul.mubr.msk.f32.vlgmr.msra.gmra.mrb[2].mxu0 %vm64_vm1, %v269_v44 }
 0x5b0   :  { %1554 = vmatpush3.bf16.msra.mxu0 %v1809_v6  ;;  %1447 = vmatprep.mubr.msk.f32.mxu0 %vm1718_vm0, %v1719_v2 }
 0x5b1   :  { %1555 = vmatprep.subr.bf16.mxu0 %v1717_v1 }
 0x5b4   :  { %1557 = vmatpush3.bf16.msra.mxu0 %v1815_v8 }
 0x5b5   :  { %1564 = vmatprep.subr.bf16.mxu0 %v1717_v1 }
 0x682   :  { %v343_v46 = vpop.f32.mrb[2].mxu0 }
 0x683   :  { %v347_v47 = vadd.f32 %v343_v46, %v274_v45  ;;  %v1427_v48 = vpop.f32.mrb[3].mxu0 }
 0x685   :  { %1617 = vtanh.f32 %v347_v47  ;;  %v1298_v50 = vmul.f32 -1.442695, %v347_v47 }
 0x687   :  { %1619 = vpow2.f32 %v1298_v50 }
 0x68f   :  { %v1618_v49 = vpop.eup %1617 }
 0x690   :  { %357 = vrot.lane.b32.xlu0 %v1618_v49, %s1720_s2 }
 0x691   :  { %v1620_v51 = vpop.eup %1619 }
 0x692   :  { %v351_v52 = vadd.f32 1.0, %v1620_v51 }
 0x694   :  { %1621 = vrcp.f32 %v351_v52 }
 0x69e   :  { %v1622_v53 = vpop.eup %1621 }
 0x69f   :  { %v355_v56 = vmul.f32 %v1622_v53, %v260_v40 }
 0x702   :  { %v358_v54 = vpop.permute.xlu0 %357 }
 0x703   :  { %v360_v55 = vmul.f32 %v1622_v53, %v358_v54  ;;  %v694_v54 = vld [vmem:[#allocation4 + $0x30] sm:$0xff] }
 0x705   :  { %362 = vrot.lane.b32.xlu1 %v360_v55, %s1721_s7 }
 0x777   :  { %v363_v57 = vpop.permute.xlu1 %362 }
 0x778   :  { %v365_v58 = vadd.f32 %v363_v57, %v355_v56 }
 0x77a   :  { %1623 = vtanh.f32 %v365_v58 }
 0x784   :  { %v1624_v59 = vpop.eup %1623 }
 0x785   :  { %368 = vrot.lane.b32.xlu0 %v1624_v59, %s1720_s2 }
 0x7f7   :  { %v369_v60 = vpop.permute.xlu0 %368 }
 0x7f8   :  { %v371_v61 = vmul.f32 %v1622_v53, %v369_v60 }
 0x7fa   :  { %373 = vrot.lane.b32.xlu1 %v371_v61, %s1721_s7 }
 0x86c   :  { %v374_v62 = vpop.permute.xlu1 %373 }
 0x86d   :  { %377 = vst.msk [vmem:[#allocation2 + $0x10] sm:$0xff] %vm64_vm1, %v374_v62  ;;  %1437 = vmatmul.mubr.msk.f32.vlgmr.msra.gmra.mrb[2].mxu1 %vm64_vm1, %v374_v62 }
 0x86e   :  { %1560 = vmatpush3.bf16.msra.mxu1 %v1809_v6  ;;  %1458 = vmatprep.mubr.msk.f32.mxu1 %vm1718_vm0, %v1719_v2 }
 0x86f   :  { %1561 = vmatprep.subr.bf16.mxu1 %v1717_v1 }
 0x872   :  { %1563 = vmatpush3.bf16.msra.mxu1 %v1815_v8 }
 0x873   :  { %1570 = vmatprep.subr.bf16.mxu1 %v1717_v1 }
 0x940   :  { %v448_v0 = vpop.f32.mrb[2].mxu1 }
 0x941   :  { %v452_v3 = vadd.f32 %v448_v0, %v379_v63  ;;  %v1438_v4 = vpop.f32.mrb[3].mxu1 }
 0x943   :  { %1625 = vtanh.f32 %v452_v3  ;;  %v1300_v7 = vmul.f32 -1.442695, %v452_v3 }
 0x945   :  { %1627 = vpow2.f32 %v1300_v7  ;;  %v999_v7 = vld [vmem:[#allocation6 + $0x8] sm:$0xff] }
 0x94d   :  { %v1626_v5 = vpop.eup %1625 }
 0x94e   :  { %462 = vrot.lane.b32.xlu0 %v1626_v5, %s1720_s2  ;;  %v998_v5 = vld [vmem:[#allocation6] sm:$0xff] }
 0x94f   :  { %v1628_v9 = vpop.eup %1627 }
 0x950   :  { %v456_v10 = vadd.f32 1.0, %v1628_v9  ;;  %v1576_v9 = vpack.c.bf16 %v999_v7, %v998_v5 }
 0x952   :  { %1629 = vrcp.f32 %v456_v10 }
 0x95c   :  { %v1630_v11 = vpop.eup %1629 }
 0x95d   :  { %v460_v14 = vmul.f32 %v1630_v11, %v365_v58 }
 0x9c0   :  { %v463_v12 = vpop.permute.xlu0 %462 }
 0x9c1   :  { %v465_v13 = vmul.f32 %v1630_v11, %v463_v12  ;;  %v903_v12 = vld [vmem:[%s1993_s1] sm:$0xff] }
 0x9c3   :  { %467 = vrot.lane.b32.xlu1 %v465_v13, %s1721_s7 }
 0xa35   :  { %v468_v15 = vpop.permute.xlu1 %467 }
 0xa36   :  { %v470_v16 = vadd.f32 %v468_v15, %v460_v14  ;;  %v1000_v15 = vld [vmem:[#allocation6 + $0x10] sm:$0xff] }
 0xa38   :  { %1631 = vtanh.f32 %v470_v16 }
 0xa42   :  { %v1632_v17 = vpop.eup %1631 }
 0xa43   :  { %473 = vrot.lane.b32.xlu0 %v1632_v17, %s1720_s2 }
 0xab5   :  { %v474_v18 = vpop.permute.xlu0 %473 }
 0xab6   :  { %v476_v19 = vmul.f32 %v1630_v11, %v474_v18  ;;  %v904_v11 = vld [vmem:[%s1996_s4] sm:$0xf] }
 0xab8   :  { %478 = vrot.lane.b32.xlu1 %v476_v19, %s1721_s7  ;;  %v990_v19 = vld [vmem:[#allocation2] sm:$0xff] }
 0xb2a   :  { %v479_v20 = vpop.permute.xlu1 %478 }
 0xb2b   :  { %482 = vst.msk [vmem:[#allocation2 + $0x18] sm:$0xff] %vm64_vm1, %v479_v20  ;;  %1448 = vmatmul.mubr.msk.f32.vlgmr.msra.gmra.mrb[4].mxu0 %vm64_vm1, %v479_v20  ;;  %v991_v20 = vld [vmem:[#allocation2 + $0x8] sm:$0xff] }
 0xb2c   :  { %1566 = vmatpush3.bf16.msra.mxu0 %v1809_v6  ;;  %1469 = vmatprep.mubr.msk.f32.mxu0 %vm1718_vm0, %v1719_v2 }
 0xb2d   :  { %1567 = vmatprep.subr.bf16.mxu0 %v1717_v1 }
 0xb30   :  { %1569 = vmatpush3.bf16.msra.mxu0 %v1815_v8 }
 0xb31   :  { %1483 = vmatprep.subr.mxu0 %v1719_v2 }
 0xbfe   :  { %v553_v22 = vpop.f32.mrb[4].mxu0 }
 0xbff   :  { %v557_v23 = vadd.f32 %v553_v22, %v484_v21  ;;  %v1449_v24 = vpop.f32.mrb[5].mxu0  ;;  %v992_v21 = vld [vmem:[#allocation2 + $0x10] sm:$0xff]  ;;  %v993_v22 = vld [vmem:[#allocation2 + $0x18] sm:$0xff] }
 0xc01   :  { %1633 = vtanh.f32 %v557_v23  ;;  %v1302_v26 = vmul.f32 -1.442695, %v557_v23 }
 0xc03   :  { %1635 = vpow2.f32 %v1302_v26  ;;  %v1139_v26 = vld [vmem:[%s1998_s6] sm:$0xff] }
 0xc0b   :  { %v1634_v25 = vpop.eup %1633 }
 0xc0c   :  { %567 = vrot.lane.b32.xlu0 %v1634_v25, %s1720_s2 }
 0xc0d   :  { %v1636_v27 = vpop.eup %1635 }
 0xc0e   :  { %v561_v28 = vadd.f32 1.0, %v1636_v27  ;;  %v1140_v27 = vld [vmem:[%s1998_s6 + $0x8] sm:$0xff] }
 0xc10   :  { %1637 = vrcp.f32 %v561_v28  ;;  %v1584_v28 = vpack.c.bf16 %v1140_v27, %v1139_v26 }
 0xc1a   :  { %v1638_v29 = vpop.eup %1637 }
 0xc1b   :  { %v565_v32 = vmul.f32 %v1638_v29, %v470_v16  ;;  %v1001_v16 = vld [vmem:[#allocation6 + $0x18] sm:$0xff] }
 0xc1c   :  { %v1580_v17 = vpack.c.bf16 %v1001_v16, %v1000_v15 }
 0xc7e   :  { %v568_v30 = vpop.permute.xlu0 %567 }
 0xc7f   :  { %v570_v31 = vmul.f32 %v1638_v29, %v568_v30 }
 0xc81   :  { %572 = vrot.lane.b32.xlu1 %v570_v31, %s1721_s7  ;;  %v1141_v31 = vld [vmem:[%s1998_s6 + $0x10] sm:$0xff] }
 0xcf3   :  { %v573_v33 = vpop.permute.xlu1 %572 }
 0xcf4   :  { %v575_v34 = vadd.f32 %v573_v33, %v565_v32  ;;  %v1142_v32 = vld [vmem:[%s1998_s6 + $0x18] sm:$0xff] }
 0xcf5   :  { %v1588_v33 = vpack.c.bf16 %v1142_v32, %v1141_v31 }
 0xcf6   :  { %1639 = vtanh.f32 %v575_v34 }
 0xd00   :  { %v1640_v35 = vpop.eup %1639 }
 0xd01   :  { %578 = vrot.lane.b32.xlu0 %v1640_v35, %s1720_s2 }
 0xd73   :  { %v579_v36 = vpop.permute.xlu0 %578 }
 0xd74   :  { %v581_v37 = vmul.f32 %v1638_v29, %v579_v36 }
 0xd76   :  { %583 = vrot.lane.b32.xlu1 %v581_v37, %s1721_s7 }
 0xde8   :  { %v584_v38 = vpop.permute.xlu1 %583 }
 0xde9   :  { %587 = vst.msk [vmem:[#allocation2 + $0x20] sm:$0xff] %vm64_vm1, %v584_v38  ;;  %1459 = vmatmul.mubr.msk.f32.vlgmr.msra.gmra.mrb[4].mxu1 %vm64_vm1, %v584_v38  ;;  %v1309_v38 = vld [vmem:[%s1997_s5] ss:$0 sm:$0xff] }
 0xdea   :  { %1572 = vmatpush3.bf16.msra.mxu1 %v1809_v6  ;;  %1480 = vmatprep.mubr.msk.f32.mxu1 %vm1718_vm0, %v1719_v2 }
 0xdeb   :  { %1573 = vmatprep.subr.bf16.mxu1 %v1717_v1 }
 0xdee   :  { %1575 = vmatpush3.bf16.msra.mxu1 %v1815_v8 }
 0xdef   :  { %1577 = vmatprep.subr.bf16.mxu1 %v1576_v9 }
 0xdf0   :  { %v994_v23 = vld [vmem:[#allocation2 + $0x20] sm:$0xff] }
 0xebc   :  { %v658_v40 = vpop.f32.mrb[4].mxu1 }
 0xebd   :  { %v662_v41 = vadd.f32 %v658_v40, %v589_v39  ;;  %v1460_v42 = vpop.f32.mrb[5].mxu1 }
 0xebf   :  { %1641 = vtanh.f32 %v662_v41  ;;  %v1304_v44 = vmul.f32 -1.442695, %v662_v41 }
 0xec1   :  { %1643 = vpow2.f32 %v1304_v44 }
 0xec9   :  { %v1642_v43 = vpop.eup %1641 }
 0xeca   :  { %672 = vrot.lane.b32.xlu0 %v1642_v43, %s1720_s2 }
 0xecb   :  { %v1644_v45 = vpop.eup %1643 }
 0xecc   :  { %v666_v46 = vadd.f32 1.0, %v1644_v45 }
 0xece   :  { %1645 = vrcp.f32 %v666_v46 }
 0xed8   :  { %v1646_v6 = vpop.eup %1645 }
 0xed9   :  { %v670_v1 = vmul.f32 %v1646_v6, %v575_v34  ;;  %v799_v34 = vld [vmem:[#allocation4 + $0x38] sm:$0xff] }
 0xf3c   :  { %v673_v47 = vpop.permute.xlu0 %672 }
 0xf3d   :  { %v675_v48 = vmul.f32 %v1646_v6, %v673_v47 }
 0xf3f   :  { %677 = vrot.lane.b32.xlu1 %v675_v48, %s1721_s7 }
 0xfb1   :  { %v678_v8 = vpop.permute.xlu1 %677 }
 0xfb2   :  { %v680_v49 = vadd.f32 %v678_v8, %v670_v1 }
 0xfb4   :  { %1647 = vtanh.f32 %v680_v49 }
 0xfbe   :  { %v1648_v50 = vpop.eup %1647 }
 0xfbf   :  { %683 = vrot.lane.b32.xlu0 %v1648_v50, %s1720_s2 }
0x1031   :  { %v684_v51 = vpop.permute.xlu0 %683 }
0x1032   :  { %v686_v52 = vmul.f32 %v1646_v6, %v684_v51 }
0x1034   :  { %688 = vrot.lane.b32.xlu1 %v686_v52, %s1721_s7 }
0x10a6   :  { %v689_v53 = vpop.permute.xlu1 %688 }
0x10a7   :  { %692 = vst.msk [vmem:[#allocation2 + $0x28] sm:$0xff] %vm64_vm1, %v689_v53  ;;  %1470 = vmatmul.mubr.msk.f32.vlgmr.msra.gmra.mrb[6].mxu0 %vm64_vm1, %v689_v53 }
0x10a8   :  { %1485 = vmatprep.mubr.msk.f32.mxu0 %vm1718_vm0, %v1719_v2  ;;  %1484 = vmatpush3.msk.msra.mxu0 %vm916_vm2, %v904_v11 }
0x10a9   :  { %1585 = vmatprep.subr.bf16.mxu0 %v1584_v28 }
0x10ab   :  { %1486 = vmatmul.mubr.msk.f32.vlgmr.msra.gmra.mrb[8].mxu0 %vm912_vm3, %v903_v12 }
0x10ac   :  { %1587 = vmatpush3.bf16.msra.mxu0 %v1584_v28 }
0x10ad   :  { %1589 = vmatprep.subr.bf16.mxu0 %v1588_v33 }
0x10ae   :  { %v995_v24 = vld [vmem:[#allocation2 + $0x28] sm:$0xff] }
0x10b0   :  { %1591 = vmatpush3.bf16.msra.mxu0 %v1588_v33 }
0x117a   :  { %v763_v55 = vpop.f32.mrb[6].mxu0 }
0x117b   :  { %v767_v56 = vadd.f32 %v763_v55, %v694_v54  ;;  %v1471_v57 = vpop.f32.mrb[7].mxu0 }
0x117d   :  { %1649 = vtanh.f32 %v767_v56  ;;  %v1306_v59 = vmul.f32 -1.442695, %v767_v56 }
0x117e   :  { %v986_v29 = vpop.f32.mrb[8].mxu0 }
0x117f   :  { %1651 = vpow2.f32 %v1306_v59  ;;  %v1487_v30 = vpop.f32.mrb[9].mxu0  ;;  %v1935_v39 = vadd.f32 %v1309_v38, %v986_v29 }
0x1187   :  { %v1650_v58 = vpop.eup %1649 }
0x1188   :  { %777 = vrot.lane.b32.xlu0 %v1650_v58, %s1720_s2 }
0x1189   :  { %v1652_v60 = vpop.eup %1651 }
0x118a   :  { %v771_v61 = vadd.f32 1.0, %v1652_v60 }
0x118c   :  { %1653 = vrcp.f32 %v771_v61 }
0x1196   :  { %v1654_v62 = vpop.eup %1653 }
0x1197   :  { %v775_v3 = vmul.f32 %v1654_v62, %v680_v49 }
0x11fa   :  { %v778_v63 = vpop.permute.xlu0 %777 }
0x11fb   :  { %v780_v0 = vmul.f32 %v1654_v62, %v778_v63 }
0x11fd   :  { %782 = vrot.lane.b32.xlu1 %v780_v0, %s1721_s7 }
0x126f   :  { %v783_v2 = vpop.permute.xlu1 %782 }
0x1270   :  { %v1900_v4 = vadd.f32 %v783_v2, %v775_v3 }
0x1272   :  { %1655 = vtanh.f32 %v1900_v4 }
0x127c   :  { %v1656_v10 = vpop.eup %1655 }
0x127d   :  { %788 = vrot.lane.b32.xlu0 %v1656_v10, %s1720_s2 }
0x12ef   :  { %v789_v13 = vpop.permute.xlu0 %788 }
0x12f0   :  { %v791_v14 = vmul.f32 %v1654_v62, %v789_v13  ;;  %v1320_v62 = vld [vmem:[#allocation3] ss:$0 sm:$0xff] }
0x12f2   :  { %793 = vrot.lane.b32.xlu1 %v791_v14, %s1721_s7 }
0x1364   :  { %v794_v18 = vpop.permute.xlu1 %793 }
0x1365   :  { %797 = vst.msk [vmem:[#allocation2 + $0x30] sm:$0xff] %vm64_vm1, %v794_v18  ;;  %1481 = vmatmul.mubr.msk.f32.vlgmr.msra.gmra.mrb[6].mxu1 %vm64_vm1, %v794_v18 }
0x1366   :  { %1579 = vmatpush3.bf16.msra.mxu1 %v1576_v9  ;;  %1496 = vmatprep.mubr.msk.f32.mxu1 %vm64_vm1, %v990_v19 }
0x1367   :  { %1581 = vmatprep.subr.bf16.mxu1 %v1580_v17 }
0x136a   :  { %1583 = vmatpush3.bf16.msra.mxu1 %v1580_v17 }
0x136c   :  { %v996_v25 = vld [vmem:[#allocation2 + $0x30] sm:$0xff] }
0x136d   :  { %1497 = vmatmul.mubr.msk.f32.vlgmr.msra.gmra.mrb[8].mxu1 %vm64_vm1, %v991_v20 }
0x136e   :  { %1499 = vmatprep.mubr.msk.f32.mxu1 %vm64_vm1, %v992_v21 }
0x1371   :  { %1500 = vmatmul.mubr.msk.f32.gmra.mrb[10].mxu1 %vm64_vm1, %v993_v22 }
0x1372   :  { %1502 = vmatprep.mubr.msk.f32.mxu1 %vm64_vm1, %v994_v23 }
0x1375   :  { %1503 = vmatmul.mubr.msk.f32.gmra.mrb[12].mxu1 %vm64_vm1, %v995_v24 }
0x1376   :  { %1505 = vmatprep.mubr.msk.f32.mxu1 %vm64_vm1, %v996_v25 }
0x1438   :  { %v868_v35 = vpop.f32.mrb[6].mxu1 }
0x1439   :  { %v872_v36 = vadd.f32 %v868_v35, %v799_v34  ;;  %v1482_v37 = vpop.f32.mrb[7].mxu1 }
0x143b   :  { %1657 = vtanh.f32 %v872_v36  ;;  %v1308_v56 = vmul.f32 -1.442695, %v872_v36 }
0x143d   :  { %1659 = vpow2.f32 %v1308_v56 }
0x1440   :  { %v1498_v40 = vpop.f32.mrb[8].mxu1 }
0x1441   :  { %v1098_v41 = vadd.f32 %v1498_v40, %v1935_v39  ;;  %v1092_v42 = vpop.f32.mrb[9].mxu1 }
0x1442   :  { %v1093_v43 = vadd.f32 %v1092_v42, %v1935_v39 }
0x1443   :  { %v1132_v6 = vmax.f32 %v1098_v41, 0.0 }
0x1444   :  { %v1131_v44 = vmax.f32 %v1093_v43, 0.0  ;;  %v1501_v45 = vpop.f32.mrb[10].mxu1 }
0x1445   :  { %v1658_v46 = vpop.eup %1657  ;;  %v1108_v47 = vadd.f32 %v1501_v45, %v1935_v39  ;;  %v1102_v48 = vpop.f32.mrb[11].mxu1 }
0x1446   :  { %v1103_v1 = vadd.f32 %v1102_v48, %v1935_v39  ;;  %1516 = vmatprep.mubr.msk.f32.mxu0 %vm64_vm1, %v1131_v44  ;;  %882 = vrot.lane.b32.xlu0 %v1658_v46, %s1720_s2 }
0x1447   :  { %1517 = vmatmul.mubr.msk.f32.vlgmr.msra.gmra.mrb[10].mxu0 %vm64_vm1, %v1132_v6  ;;  %v1134_v50 = vmax.f32 %v1108_v47, 0.0  ;;  %v1660_v57 = vpop.eup %1659 }
0x1448   :  { %v1133_v8 = vmax.f32 %v1103_v1, 0.0  ;;  %v1504_v49 = vpop.f32.mrb[12].mxu1  ;;  %v876_v58 = vadd.f32 1.0, %v1660_v57 }
0x1449   :  { %v1118_v51 = vadd.f32 %v1504_v49, %v1935_v39  ;;  %v1112_v52 = vpop.f32.mrb[13].mxu1 }
0x144a   :  { %v1113_v53 = vadd.f32 %v1112_v52, %v1935_v39  ;;  %1519 = vmatprep.mubr.msk.f32.mxu0 %vm64_vm1, %v1133_v8  ;;  %1661 = vrcp.f32 %v876_v58 }
0x144b   :  { %1520 = vmatmul.mubr.msk.f32.gmra.mrb[12].mxu0 %vm64_vm1, %v1134_v50  ;;  %v1136_v55 = vmax.f32 %v1118_v51, 0.0 }
0x144c   :  { %v1135_v54 = vmax.f32 %v1113_v53, 0.0 }
0x144e   :  { %1522 = vmatprep.mubr.msk.f32.mxu0 %vm64_vm1, %v1135_v54 }
0x144f   :  { %1523 = vmatmul.mubr.msk.f32.gmra.mrb[14].mxu0 %vm64_vm1, %v1136_v55 }
0x1454   :  { %v1662_v59 = vpop.eup %1661 }
0x1455   :  { %v880_v15 = vmul.f32 %v1662_v59, %v1900_v4 }
0x14b8   :  { %v883_v60 = vpop.permute.xlu0 %882 }
0x14b9   :  { %v885_v61 = vmul.f32 %v1662_v59, %v883_v60 }
0x14bb   :  { %887 = vrot.lane.b32.xlu1 %v885_v61, %s1721_s7 }
0x151a   :  { %v1518_v63 = vpop.f32.mrb[10].mxu0 }
0x151b   :  { %v1246_v0 = vadd.f32 %v1518_v63, %v1320_v62  ;;  %v1240_v3 = vpop.f32.mrb[11].mxu0 }
0x151c   :  { %v1241_v2 = vadd.f32 %v1320_v62, %v1240_v3 }
0x151d   :  { %1281 = vst.msk [vmem:[%s2000_s8 + $0x8] sm:$0xff] %vm1279_vm4, %v1246_v0 }
0x151e   :  { %1280 = vst.msk [vmem:[%s2000_s8] sm:$0xff] %vm1279_vm4, %v1241_v2  ;;  %v1521_v5 = vpop.f32.mrb[12].mxu0 }
0x151f   :  { %v1256_v7 = vadd.f32 %v1521_v5, %v1320_v62  ;;  %v1250_v9 = vpop.f32.mrb[13].mxu0 }
0x1520   :  { %v1251_v10 = vadd.f32 %v1320_v62, %v1250_v9 }
0x1521   :  { %1283 = vst.msk [vmem:[%s2000_s8 + $0x18] sm:$0xff] %vm1279_vm4, %v1256_v7 }
0x1522   :  { %1282 = vst.msk [vmem:[%s2000_s8 + $0x10] sm:$0xff] %vm1279_vm4, %v1251_v10  ;;  %v1524_v11 = vpop.f32.mrb[14].mxu0 }
0x1523   :  { %v1266_v12 = vadd.f32 %v1524_v11, %v1320_v62  ;;  %v1260_v13 = vpop.f32.mrb[15].mxu0 }
0x1524   :  { %v1261_v14 = vadd.f32 %v1320_v62, %v1260_v13 }
0x1525   :  { %1285 = vst.msk [vmem:[%s2000_s8 + $0x28] sm:$0xff] %vm1279_vm4, %v1266_v12 }
0x1526   :  { %1284 = vst.msk [vmem:[%s2000_s8 + $0x20] sm:$0xff] %vm1279_vm4, %v1261_v14 }
0x152d   :  { %v888_v16 = vpop.permute.xlu1 %887 }
0x152e   :  { %v890_v17 = vadd.f32 %v888_v16, %v880_v15 }
0x1530   :  { %1663 = vtanh.f32 %v890_v17 }
0x153a   :  { %v1664_v18 = vpop.eup %1663 }
0x153b   :  { %893 = vrot.lane.b32.xlu0 %v1664_v18, %s1720_s2 }
0x15ad   :  { %v894_v19 = vpop.permute.xlu0 %893 }
0x15ae   :  { %v896_v20 = vmul.f32 %v1662_v59, %v894_v19 }
0x15b0   :  { %898 = vrot.lane.b32.xlu1 %v896_v20, %s1721_s7 }
0x1622   :  { %v899_v21 = vpop.permute.xlu1 %898 }
0x1623   :  { %902 = vst.msk [vmem:[#allocation2 + $0x38] sm:$0xff] %vm64_vm1, %v899_v21 }
0x162a   :  { %v997_v22 = vld [vmem:[#allocation2 + $0x38] sm:$0xff] }
0x162b   :  { %1506 = vmatmul.mubr.msk.f32.gmra.mrb[14].mxu1 %vm64_vm1, %v997_v22 }
0x16fe   :  { %v1507_v23 = vpop.f32.mrb[14].mxu1 }
0x16ff   :  { %v1128_v24 = vadd.f32 %v1507_v23, %v1935_v39  ;;  %v1122_v4 = vpop.f32.mrb[15].mxu1 }
0x1700   :  { %v1123_v25 = vadd.f32 %v1122_v4, %v1935_v39 }
0x1701   :  { %v1138_v27 = vmax.f32 %v1128_v24, 0.0 }
0x1702   :  { %v1137_v26 = vmax.f32 %v1123_v25, 0.0 }
0x1704   :  { %1525 = vmatprep.mubr.msk.f32.mxu0 %vm64_vm1, %v1137_v26 }
0x1705   :  { %1526 = vmatmul.mubr.msk.f32.gmra.mrb[16].mxu0 %vm64_vm1, %v1138_v27 }
0x17d8   :  { %v1527_v28 = vpop.f32.mrb[16].mxu0 }
0x17d9   :  { %v1276_v29 = vadd.f32 %v1527_v28, %v1320_v62  ;;  %v1270_v30 = vpop.f32.mrb[17].mxu0 }
0x17da   :  { %v1271_v31 = vadd.f32 %v1320_v62, %v1270_v30 }
0x17db   :  { %1287 = vst.msk [vmem:[%s2000_s8 + $0x38] sm:$0xff] %vm1279_vm4, %v1276_v29 }
0x17dc   :  { %1286 = vst.msk [vmem:[%s2000_s8 + $0x30] sm:$0xff] %vm1279_vm4, %v1271_v31 }
0x17dd   :  { %1292 = vsyncpa [#allocation5], 1 }
0x17de   :  { %1293 = vsyncpa [#allocation7], 1 }

</bundles_post_ra>
